<compile_context>
chip_gen: v7x
topology: tpu7x:2x2x1
jax: 0.10.0
libtpu: 0.0.40
codegen_flags: <defaults>
</compile_context>

<pallas_src>
import functools

import jax
import jax.numpy as jnp
from jax.experimental import pallas as pl
from jax.experimental.pallas import tpu as pltpu


def _cosface_kernel(labels_ref, logits_ref, out_ref, *, s: float, m: float):
    tb, tc = out_ref.shape
    col0 = pl.program_id(1) * tc  # element offset of this class tile

    # Shift the (tb, 1) labels into tile-local coordinates (1 column of work)
    # instead of adding col0 to every vreg of the (tb, tc) iota.
    lab_local = labels_ref[...] - col0                           # (tb, 1) int32
    cols = jax.lax.broadcasted_iota(jnp.int32, (tb, tc), 1)      # tile-local
    is_target = cols == lab_local                                # (tb, tc) bool

    x = logits_ref[...].astype(jnp.float32)
    s_f = jnp.float32(s)
    ms_f = jnp.float32(m * s)  # fold margin * scale into one constant
    # (x - m*one_hot) * s  ==  x*s - (m*s)*one_hot
    out = x * s_f - jnp.where(is_target, ms_f, jnp.float32(0.0))
    out_ref[...] = out.astype(out_ref.dtype)


def _pick_tiles(B: int, C: int, itemsize: int,
                tile_bytes: int = 4 * 1024 * 1024) -> tuple[int, int]:
    """Byte-based tile sizing: ~tile_bytes per (tb, tc) logits tile.

    Bias wide (small tb, large tc) so each tile row is a long contiguous HBM
    burst and stores stay lane-dense.  Never falls back to a full, oversized
    class dimension: if tc < C it is a multiple of 128 and the ragged last
    block is handled by Pallas (padded read, masked store).
    """
    tb = B if B <= 128 else 128                     # full dim or multiple of 8
    tc = (tile_bytes // (tb * itemsize)) // 128 * 128
    tc = max(tc, 128)
    if tc >= C:
        tc = C                                      # full dim always legal
    return tb, tc


def cosface(logits: jax.Array, labels: jax.Array, *, s: float = 64.0, m: float = 0.4,
            tb: int | None = None, tc: int | None = None) -> jax.Array:
    B, C = logits.shape
    itemsize = jnp.dtype(logits.dtype).itemsize

    auto_tb, auto_tc = _pick_tiles(B, C, itemsize)
    if tb is None:
        tb = auto_tb
    if tc is None:
        tc = auto_tc

    labels2d = labels.reshape(B, 1).astype(jnp.int32)
    kernel = functools.partial(_cosface_kernel, s=float(s), m=float(m))

    # Ragged grid: Pallas pads partial blocks on read and masks the store.
    grid = (pl.cdiv(B, tb), pl.cdiv(C, tc))

    return pl.pallas_call(
        kernel,
        out_shape=jax.ShapeDtypeStruct((B, C), logits.dtype),
        grid_spec=pl.GridSpec(
            grid=grid,
            in_specs=[
                # labels: one (tb, 1) block per batch tile, reused across class tiles
                pl.BlockSpec((tb, 1), lambda i, j: (i, 0)),
                # logits: wide, lane-dense (tb, tc) tile (default double-buffered)
                pl.BlockSpec((tb, tc), lambda i, j: (i, j)),
            ],
            out_specs=pl.BlockSpec((tb, tc), lambda i, j: (i, j)),
        ),
        compiler_params=pltpu.CompilerParams(
            # Both axes are independent -> megacore can split the stream
            # across the two TensorCores on v7x.
            dimension_semantics=("parallel", "parallel"),
            # ~16 MiB live with 2+2 buffering of 4 MiB tiles; 48 MiB headroom
            # is within physical VMEM on v5e/v6e (128 MiB) and v7x (64 MiB).
            vmem_limit_bytes=48 * 1024 * 1024,
        ),
        cost_estimate=pl.CostEstimate(
            flops=3 * B * C,
            transcendentals=0,
            bytes_accessed=2 * B * C * itemsize + B * 4,
        ),
        # The torch op mutates `logits` in place: alias its buffer for the
        # output.  Callers must donate `logits` under jit to get the in-place
        # benefit; without donation XLA copies defensively (still correct).
        input_output_aliases={1: 0},
    )(labels2d, logits)


def cosface_ref(logits, labels, *, s=64.0, m=0.4):
    B, C = logits.shape
    one_hot = jax.nn.one_hot(labels, C, dtype=logits.dtype)
    return (logits - m * one_hot) * s


if __name__ == "__main__":
    key = jax.random.PRNGKey(0)
    k1, k2 = jax.random.split(key)

    B, C = 8, 128          # small synthetic shapes (batch x num_classes)
    s_param, m_param = 64.0, 0.4

    # CosFace has no learnable parameters (only scalar s, m).
    logits = jax.random.normal(k1, (B, C), dtype=jnp.float32)
    labels = jax.random.randint(k2, (B,), 0, C, dtype=jnp.int32)

    # Reference computed before the (aliased) kernel call.
    ref = cosface_ref(logits, labels, s=s_param, m=m_param)

    out = cosface(logits, labels, s=s_param, m=m_param)
    out = jax.block_until_ready(out)

    assert out.shape == (B, C) and out.dtype == jnp.float32
    assert jnp.allclose(out, ref, atol=1e-4, rtol=1e-5), "mismatch vs reference"

    # Exercise a non-friendly shape (ragged grid on both axes, tc < C).
    B2, C2 = 40, 1000
    logits2 = jax.random.normal(k1, (B2, C2), dtype=jnp.float32)
    labels2 = jax.random.randint(k2, (B2,), 0, C2, dtype=jnp.int32)
    ref2 = cosface_ref(logits2, labels2, s=s_param, m=m_param)
    out2 = jax.block_until_ready(
        cosface(logits2, labels2, s=s_param, m=m_param, tb=8, tc=128))
    assert jnp.allclose(out2, ref2, atol=1e-4, rtol=1e-5), "ragged-grid mismatch"

    print("KERNEL_OK")
</pallas_src>

<mosaic_0001>
module attributes {stable_mosaic.version = 11 : i64} {
  func.func @_cosface_kernel(%arg0: i32, %arg1: i32, %arg2: memref<8x1xi32, #tpu.memory_space<vmem>>, %arg3: memref<8x128xf32, #tpu.memory_space<vmem>>, %arg4: memref<8x128xf32, #tpu.memory_space<vmem>>) attributes {dimension_semantics = [#tpu.dimension_semantics<parallel>, #tpu.dimension_semantics<parallel>], iteration_bounds = array<i64: 1, 1>, scalar_prefetch = 0 : i64, scratch_operands = 0 : i64, tpu.core_type = #tpu.core_type<tc>, window_params = [{transform_indices = @transform_0, window_bounds = array<i64: 8, 1>}, {transform_indices = @transform_1, window_bounds = array<i64: 8, 128>}, {transform_indices = @transform_2, window_bounds = array<i64: 8, 128>}]} {
    %c128_i32 = arith.constant 128 : i32
    %0 = arith.muli %arg1, %c128_i32 : i32
    %c0 = arith.constant 0 : index
    %c0_0 = arith.constant 0 : index
    %1 = vector.load %arg2[%c0, %c0_0] : memref<8x1xi32, #tpu.memory_space<vmem>>, vector<8x1xi32>
    %2 = vector.broadcast %0 : i32 to vector<8x1xi32>
    %3 = arith.subi %1, %2 : vector<8x1xi32>
    %4 = tpu.iota {dimensions = array<i32: 1>} : vector<8x128xi32>
    %5 = vector.broadcast %3 : vector<8x1xi32> to vector<8x128xi32>
    %6 = arith.cmpi eq, %4, %5 : vector<8x128xi32>
    %c0_1 = arith.constant 0 : index
    %c0_2 = arith.constant 0 : index
    %7 = vector.load %arg3[%c0_1, %c0_2] : memref<8x128xf32, #tpu.memory_space<vmem>>, vector<8x128xf32>
    %cst = arith.constant 6.400000e+01 : f32
    %8 = vector.broadcast %cst : f32 to vector<8x128xf32>
    %9 = arith.mulf %7, %8 : vector<8x128xf32>
    %cst_3 = arith.constant 2.560000e+01 : f32
    %cst_4 = arith.constant 0.000000e+00 : f32
    %10 = vector.broadcast %cst_3 : f32 to vector<8x128xf32>
    %11 = vector.broadcast %cst_4 : f32 to vector<8x128xf32>
    %12 = arith.select %6, %10, %11 : vector<8x128xi1>, vector<8x128xf32>
    %13 = arith.subf %9, %12 : vector<8x128xf32>
    %c0_5 = arith.constant 0 : index
    %c0_6 = arith.constant 0 : index
    %14 = vector.load %arg4[%c0_5, %c0_6] : memref<8x128xf32, #tpu.memory_space<vmem>>, vector<8x128xf32>
    tpu.vector_store %arg4[%c0_5, %c0_6], %13 {strides = array<i32>} : memref<8x128xf32, #tpu.memory_space<vmem>>, vector<8x128xf32>,
    return
  }
  func.func @transform_0(%arg0: i32, %arg1: i32) -> (i32, i32) {
    %c0_i32 = arith.constant 0 : i32
    %c0_i32_0 = arith.constant 0 : i32
    return %arg0, %c0_i32 : i32, i32
  }
  func.func @transform_1(%arg0: i32, %arg1: i32) -> (i32, i32) {
    %c0_i32 = arith.constant 0 : i32
    return %arg0, %arg1 : i32, i32
  }
  func.func @transform_2(%arg0: i32, %arg1: i32) -> (i32, i32) {
    %c0_i32 = arith.constant 0 : i32
    return %arg0, %arg1 : i32, i32
  }
}

</mosaic_0001>

<bundles_post_ra>
// kernel: tpu_custom_call.1
= control target key start
LH: loop header
LB: loop body
LE: loop exit
PB: predicated region body
PF: predicated region fallthrough
CT: control target
= control target key end

     0   :  { %7 = vsyncpa [#allocation3], 0  ;;  %s153_s0 = inlined_call_operand.vmem [shape: s32[8,1], index: 0, kind: input, shape index: {}]   ;;  %s154_s1 = inlined_call_operand.hbm [shape: f32[8,128], index: 1, kind: input, shape index: {}, may-alias: {1,2}]   ;;  %s155_s2 = inlined_call_operand.hbm [shape: f32[8,128], index: 2, kind: output, shape index: {}, may-alias: {1,2}]  }
   0x1   :  { %8 = vsyncpa [#allocation4], 0  ;;  %s107_s9 = smov [#allocation2]   ;;  %s59_s13 = scalar_lea.hbm %s154_s1, 128 }
   0x2   :  { %s17_s10 = sshll.u32 %s107_s9, 4  ;;  %p60_p0 = scmp.ne.s32.totalorder %s154_s1, %s59_s13  ;;  %s18_s10 = int_to_ptr.vmem [resolvable:$true] %s17_s10 }
   0x3   :  { %p63_p1 = scmp.lt.u32.totalorder %s59_s13, %s154_s1 }
   0x5   :  { %p65_p2 = pnand %p63_p1, %p60_p0 }
   0x7   :  { %68 = shalt.err (!%p65_p2)
}
   0x8   :  { %s69_s18 = scalar_lea.vmem %s18_s10, 128  ;;  %p74_p4 = scmp.lt.s32.totalorder %s18_s10, %s18_s10 }
   0x9   :  { %p70_p3 = scmp.ne.s32.totalorder %s18_s10, %s69_s18  ;;  %p75_p5 = scmp.lt.s32.totalorder %s69_s18, %s69_s18 }
   0xb   :  { %p76_p6 = por %p75_p5, %p74_p4 }
   0xd   :  { %p77_p7 = pnand %p76_p6, %p70_p3 }
   0xf   :  { %80 = shalt.err (!%p77_p7)
}
  0x10   :  { %20 = dma.hbm_to_vmem [thread:$0]  %s154_s1, 128, %s18_s10, [#allocation3]  }
  0x11   :  { %103 = dma.done.wait [#allocation3], 128  }
  0x12   :  { %104 = vsyncadd [#allocation3], 4294967168  ;;  %v108_v0 = vmov 0   ;;  %v25_v1 = vld [vmem:[%s153_s0] sm:$0xff]  ;;  %v28_v2 = vlaneseq  ;;  %s109_s23 = smov [#allocation5]   ;;  %v110_v7 = vmov 0.0  }
  0x13   :  { %58 = vset.pattern.permute.xlu0 %v108_v0  ;;  %v34_v3 = vld [vmem:[#allocation2] sm:$0xff]  ;;  %s45_s24 = sshll.u32 %s109_s23, 4  ;;  %s46_s24 = int_to_ptr.vmem [resolvable:$true] %s45_s24 }
  0x14   :  { %31 = vperm.xlu0 %58, %v25_v1   ;;  %v29_v4 = vand.u32 127, %v28_v2  ;;  %v35_v5 = vmul.f32 64.0, %v34_v3  ;;  %s81_s1 = scalar_lea.vmem %s46_s24, 128  ;;  %p86_p9 = scmp.lt.s32.totalorder %s46_s24, %s46_s24 }
  0x15   :  { %p82_p8 = scmp.ne.s32.totalorder %s46_s24, %s81_s1  ;;  %p87_p10 = scmp.lt.s32.totalorder %s81_s1, %s81_s1 }
  0x17   :  { %p88_p11 = por %p87_p10, %p86_p9 }
  0x19   :  { %p89_p12 = pnand %p88_p11, %p82_p8 }
  0x93   :  { %v32_v6 = vpop.permute.xlu0 %31 }
  0x94   :  { %vm33_vm0 = vcmp.eq.s32.totalorder %v29_v4, %v32_v6 }
  0x95   :  { %v36_v8 = vsel %vm33_vm0, 25.6, %v110_v7 }
  0x96   :  { %v37_v9 = vsub.f32 %v35_v5, %v36_v8 }
  0x98   :  { %38 = vst [vmem:[#allocation5] sm:$0xff] %v37_v9 }
  0x99   :  { %92 = shalt.err (!%p89_p12)
}
  0x9a   :  { %s93_s26 = scalar_lea.hbm %s155_s2, 128 }
  0x9b   :  { %p94_p13 = scmp.ne.s32.totalorder %s155_s2, %s93_s26  ;;  %p97_p0 = scmp.lt.u32.totalorder %s93_s26, %s155_s2 }
  0x9d   :  { %p99_p1 = pnand %p97_p0, %p94_p13 }
  0x9f   :  { %102 = shalt.err (!%p99_p1)
}
  0xa0   :  { %48 = dma.vmem_to_hbm [thread:$0]  %s46_s24, 128, %s155_s2, [#allocation4]  }
  0xa1   :  { %105 = dma.done.wait [#allocation4], 128  }
  0xa2   :  { %106 = vsyncadd [#allocation4], 4294967168 }
  0xa3   :  { %52 = vsyncpa [#allocation3], 1 }
  0xa4   :  { %53 = vsyncpa [#allocation4], 1 }

</bundles_post_ra>
